<compile_context>
chip_gen: v6e
topology: v6e:2x2x1
jax: 0.10.0
libtpu: 0.0.40
codegen_flags: <defaults>
</compile_context>

<pallas_src>
import functools

import jax
import jax.numpy as jnp
from jax.experimental import pallas as pl
from jax.experimental.pallas import tpu as pltpu


def _mlp_kernel(x_ref, w1_ref, b1_ref, w2_ref, b2_ref, w3_ref, b3_ref, o_ref):
    """Fused 3-layer MLP on one [tile_n, in_dim] row tile (natural layout)."""
    # MXU operands in the weight dtype (bf16 by default); accumulate in f32.
    x = x_ref[...].astype(w1_ref.dtype)

    # Layer 1: [tile, in] @ [in, hid] -> [tile, hid]; bias add + tanh in f32
    # (v5e-safe: no bf16 VPU/EUP there).
    h = jnp.tanh(
        jnp.dot(x, w1_ref[...], preferred_element_type=jnp.float32) + b1_ref[...]
    )
    # Layer 2: [tile, hid] @ [hid, hid] -> [tile, hid]
    h = jnp.tanh(
        jnp.dot(h.astype(w2_ref.dtype), w2_ref[...],
                preferred_element_type=jnp.float32) + b2_ref[...]
    )
    # Layer 3 (no activation): [tile, hid] @ [hid, hid] -> [tile, hid]
    out = (
        jnp.dot(h.astype(w3_ref.dtype), w3_ref[...],
                preferred_element_type=jnp.float32) + b3_ref[...]
    )
    o_ref[...] = out.astype(o_ref.dtype)


def _round_up(a, b):
    return ((a + b - 1) // b) * b


@functools.partial(jax.jit, static_argnames=("tile_n", "mxu_dtype", "out_dtype"))
def processer_forward(x, params, *, tile_n=4096, mxu_dtype=jnp.bfloat16,
                      out_dtype=None):
    """x: [N, in_dim] (f32 or bf16); params: PyTorch-layout weights
    w{1,2,3}: [out, in], b{1,2,3}: [out]."""
    n, in_dim = x.shape
    hid_dim, in_dim_w = params["w1"].shape
    assert in_dim_w == in_dim, "w1 must have shape [hid_dim, in_dim]"

    # --- row tiling -----------------------------------------------------------
    # Rows (N) sit on the sublane axis; ALIGN=128 keeps blocks (8,128)-legal for
    # f32/bf16/int8 alike. The trailing block may be partial (clipped DMA).
    ALIGN = 128
    max_tile = max(ALIGN, (int(tile_n) // ALIGN) * ALIGN)
    tile = min(max_tile, _round_up(n, ALIGN))
    # Guarantee >= 2 grid steps when there are enough rows, so the "parallel"
    # grid axis actually uses both TensorCores on v7x.
    if -(-n // tile) < 2 and n > ALIGN:
        tile = max(ALIGN, _round_up((n + 1) // 2, ALIGN))
    grid = (-(-n // tile),)

    # --- parameter prep (tiny: 3x 32x32 weights + biases) ---------------------
    cd = mxu_dtype if mxu_dtype is not None else params["w1"].dtype
    w1t = params["w1"].T.astype(cd)            # [in,  hid]
    w2t = params["w2"].T.astype(cd)            # [hid, hid]
    w3t = params["w3"].T.astype(cd)            # [hid, hid]
    b1 = params["b1"].reshape(1, hid_dim).astype(jnp.float32)
    b2 = params["b2"].reshape(1, hid_dim).astype(jnp.float32)
    b3 = params["b3"].reshape(1, hid_dim).astype(jnp.float32)
    odt = out_dtype if out_dtype is not None else x.dtype

    # Constant index_map keeps weights/biases VMEM-resident across the grid.
    def const_spec(shape):
        return pl.BlockSpec(shape, lambda i: (0, 0))

    cost = pl.CostEstimate(
        flops=2 * n * hid_dim * (in_dim + 2 * hid_dim),
        transcendentals=2 * n * hid_dim,
        bytes_accessed=(
            n * in_dim * x.dtype.itemsize                    # stream x in
            + n * hid_dim * jnp.dtype(odt).itemsize          # stream y out
            + (in_dim * hid_dim + 2 * hid_dim * hid_dim) * jnp.dtype(cd).itemsize
            + 3 * hid_dim * 4                                # f32 biases
        ),
    )

    return pl.pallas_call(
        _mlp_kernel,
        out_shape=jax.ShapeDtypeStruct((n, hid_dim), odt),
        grid_spec=pltpu.PrefetchScalarGridSpec(
            num_scalar_prefetch=0,
            grid=grid,
            in_specs=[
                pl.BlockSpec((tile, in_dim), lambda i: (i, 0)),   # x row tile
                const_spec((in_dim, hid_dim)),                    # w1^T
                const_spec((1, hid_dim)),                         # b1
                const_spec((hid_dim, hid_dim)),                   # w2^T
                const_spec((1, hid_dim)),                         # b2
                const_spec((hid_dim, hid_dim)),                   # w3^T
                const_spec((1, hid_dim)),                         # b3
            ],
            out_specs=pl.BlockSpec((tile, hid_dim), lambda i: (i, 0)),
        ),
        compiler_params=pltpu.CompilerParams(
            dimension_semantics=("parallel",),
            vmem_limit_bytes=32 * 1024 * 1024,
        ),
        cost_estimate=cost,
    )(x, w1t, b1, w2t, b2, w3t, b3)


def init_params(key, in_dim, hid_dim, dtype=jnp.float32):
    """Deterministic init mimicking nn.Linear's U(-1/sqrt(fan_in), 1/sqrt(fan_in)).

    Weights use PyTorch's native [out_features, in_features] layout, biases [out].
    """
    ks = jax.random.split(key, 6)

    def lin(kw, kb, fan_in, fan_out):
        bound = 1.0 / jnp.sqrt(jnp.array(fan_in, dtype))
        w = jax.random.uniform(kw, (fan_out, fan_in), dtype, -bound, bound)
        b = jax.random.uniform(kb, (fan_out,), dtype, -bound, bound)
        return w, b

    w1, b1 = lin(ks[0], ks[1], in_dim, hid_dim)
    w2, b2 = lin(ks[2], ks[3], hid_dim, hid_dim)
    w3, b3 = lin(ks[4], ks[5], hid_dim, hid_dim)
    return {"w1": w1, "b1": b1, "w2": w2, "b2": b2, "w3": w3, "b3": b3}


def _reference(x, p, mxu_dtype=None):
    """Pure-JAX reference mirroring the kernel's (optional) bf16 MXU operands."""
    cast = (lambda a: a.astype(mxu_dtype)) if mxu_dtype is not None else (lambda a: a)
    h = jnp.tanh(
        jnp.dot(cast(x), cast(p["w1"]).T, preferred_element_type=jnp.float32) + p["b1"]
    )
    h = jnp.tanh(
        jnp.dot(cast(h), cast(p["w2"]).T, preferred_element_type=jnp.float32) + p["b2"]
    )
    return jnp.dot(cast(h), cast(p["w3"]).T, preferred_element_type=jnp.float32) + p["b3"]


if __name__ == "__main__":
    key = jax.random.PRNGKey(0)
    k_x, k_p, k_x2 = jax.random.split(key, 3)

    N, IN_DIM, HID_DIM = 256, 32, 32
    x = jax.random.normal(k_x, (N, IN_DIM), dtype=jnp.float32)
    params = init_params(k_p, IN_DIM, HID_DIM)

    # 1) Pure-f32 path (tight tolerance against f32 reference).
    out_f32 = jax.block_until_ready(processer_forward(x, params, mxu_dtype=None))
    ref_f32 = _reference(x, params)
    assert out_f32.shape == (N, HID_DIM)
    assert jnp.allclose(out_f32, ref_f32, atol=5e-5, rtol=5e-5), "f32 mismatch"

    # 2) Default bf16-MXU-operand path (f32 stream, f32 bias/tanh, f32 acc).
    out_bf16 = jax.block_until_ready(processer_forward(x, params))
    ref_bf16 = _reference(x, params, mxu_dtype=jnp.bfloat16)
    assert jnp.allclose(out_bf16, ref_bf16, atol=2e-2, rtol=2e-2), "bf16 mismatch"

    # 3) Ragged N + multi-step grid with a partial trailing block (no padding,
    #    no wrapper copies).
    N2 = 300
    x2 = jax.random.normal(k_x2, (N2, IN_DIM), dtype=jnp.float32)
    out2 = jax.block_until_ready(
        processer_forward(x2, params, tile_n=128, mxu_dtype=None)
    )
    ref2 = _reference(x2, params)
    assert out2.shape == (N2, HID_DIM)
    assert jnp.allclose(out2, ref2, atol=5e-5, rtol=5e-5), "ragged-N mismatch"

    # 4) bf16-streamed input -> bf16 output (bandwidth-saving path).
    x_bf = x.astype(jnp.bfloat16)
    out_bf = jax.block_until_ready(processer_forward(x_bf, params))
    ref_bf = _reference(x_bf.astype(jnp.float32), params, mxu_dtype=jnp.bfloat16)
    assert out_bf.dtype == jnp.bfloat16
    assert jnp.allclose(out_bf.astype(jnp.float32), ref_bf,
                        atol=3e-2, rtol=3e-2), "bf16-stream mismatch"

    print("KERNEL_OK")
</pallas_src>

<mosaic_0001>
module attributes {stable_mosaic.version = 11 : i64} {
  func.func @_mlp_kernel(%arg0: i32, %arg1: memref<128x32xf32, #tpu.memory_space<vmem>>, %arg2: memref<32x32xf32, #tpu.memory_space<vmem>>, %arg3: memref<1x32xf32, #tpu.memory_space<vmem>>, %arg4: memref<32x32xf32, #tpu.memory_space<vmem>>, %arg5: memref<1x32xf32, #tpu.memory_space<vmem>>, %arg6: memref<32x32xf32, #tpu.memory_space<vmem>>, %arg7: memref<1x32xf32, #tpu.memory_space<vmem>>, %arg8: memref<128x32xf32, #tpu.memory_space<vmem>>) attributes {dimension_semantics = [#tpu.dimension_semantics<parallel>], iteration_bounds = array<i64: 2>, scalar_prefetch = 0 : i64, scratch_operands = 0 : i64, tpu.core_type = #tpu.core_type<tc>, window_params = [{transform_indices = @transform_0, window_bounds = array<i64: 128, 32>}, {pipeline_mode = #tpu.pipeline_mode<synchronous>, transform_indices = @transform_1, window_bounds = array<i64: 32, 32>}, {pipeline_mode = #tpu.pipeline_mode<synchronous>, transform_indices = @transform_2, window_bounds = array<i64: 1, 32>}, {pipeline_mode = #tpu.pipeline_mode<synchronous>, transform_indices = @transform_3, window_bounds = array<i64: 32, 32>}, {pipeline_mode = #tpu.pipeline_mode<synchronous>, transform_indices = @transform_4, window_bounds = array<i64: 1, 32>}, {pipeline_mode = #tpu.pipeline_mode<synchronous>, transform_indices = @transform_5, window_bounds = array<i64: 32, 32>}, {pipeline_mode = #tpu.pipeline_mode<synchronous>, transform_indices = @transform_6, window_bounds = array<i64: 1, 32>}, {transform_indices = @transform_7, window_bounds = array<i64: 128, 32>}]} {
    %c0 = arith.constant 0 : index
    %c0_0 = arith.constant 0 : index
    %0 = vector.load %arg1[%c0, %c0_0] : memref<128x32xf32, #tpu.memory_space<vmem>>, vector<128x32xf32>
    %c0_1 = arith.constant 0 : index
    %c0_2 = arith.constant 0 : index
    %1 = vector.load %arg2[%c0_1, %c0_2] : memref<32x32xf32, #tpu.memory_space<vmem>>, vector<32x32xf32>
    %cst = arith.constant dense<0.000000e+00> : vector<128x32xf32>
    %2 = tpu.matmul %0, %1, %cst {dimension_numbers = #tpu.dot_dimension_numbers<[1], [0], [0], [1], [0, 0, 1, 1], [], []>} : vector<128x32xf32>, vector<32x32xf32>, vector<128x32xf32> -> vector<128x32xf32>
    %c0_3 = arith.constant 0 : index
    %c0_4 = arith.constant 0 : index
    %3 = vector.load %arg3[%c0_3, %c0_4] : memref<1x32xf32, #tpu.memory_space<vmem>>, vector<1x32xf32>
    %4 = vector.broadcast %3 : vector<1x32xf32> to vector<128x32xf32>
    %5 = arith.addf %2, %4 : vector<128x32xf32>
    %6 = math.tanh %5 : vector<128x32xf32>
    %c0_5 = arith.constant 0 : index
    %c0_6 = arith.constant 0 : index
    %7 = vector.load %arg4[%c0_5, %c0_6] : memref<32x32xf32, #tpu.memory_space<vmem>>, vector<32x32xf32>
    %cst_7 = arith.constant dense<0.000000e+00> : vector<128x32xf32>
    %8 = tpu.matmul %6, %7, %cst_7 {dimension_numbers = #tpu.dot_dimension_numbers<[1], [0], [0], [1], [0, 0, 1, 1], [], []>} : vector<128x32xf32>, vector<32x32xf32>, vector<128x32xf32> -> vector<128x32xf32>
    %c0_8 = arith.constant 0 : index
    %c0_9 = arith.constant 0 : index
    %9 = vector.load %arg5[%c0_8, %c0_9] : memref<1x32xf32, #tpu.memory_space<vmem>>, vector<1x32xf32>
    %10 = vector.broadcast %9 : vector<1x32xf32> to vector<128x32xf32>
    %11 = arith.addf %8, %10 : vector<128x32xf32>
    %12 = math.tanh %11 : vector<128x32xf32>
    %c0_10 = arith.constant 0 : index
    %c0_11 = arith.constant 0 : index
    %13 = vector.load %arg6[%c0_10, %c0_11] : memref<32x32xf32, #tpu.memory_space<vmem>>, vector<32x32xf32>
    %cst_12 = arith.constant dense<0.000000e+00> : vector<128x32xf32>
    %14 = tpu.matmul %12, %13, %cst_12 {dimension_numbers = #tpu.dot_dimension_numbers<[1], [0], [0], [1], [0, 0, 1, 1], [], []>} : vector<128x32xf32>, vector<32x32xf32>, vector<128x32xf32> -> vector<128x32xf32>
    %c0_13 = arith.constant 0 : index
    %c0_14 = arith.constant 0 : index
    %15 = vector.load %arg7[%c0_13, %c0_14] : memref<1x32xf32, #tpu.memory_space<vmem>>, vector<1x32xf32>
    %16 = vector.broadcast %15 : vector<1x32xf32> to vector<128x32xf32>
    %17 = arith.addf %14, %16 : vector<128x32xf32>
    %c0_15 = arith.constant 0 : index
    %c0_16 = arith.constant 0 : index
    %18 = vector.load %arg8[%c0_15, %c0_16] : memref<128x32xf32, #tpu.memory_space<vmem>>, vector<128x32xf32>
    tpu.vector_store %arg8[%c0_15, %c0_16], %17 {strides = array<i32>} : memref<128x32xf32, #tpu.memory_space<vmem>>, vector<128x32xf32>,
    return
  }
  func.func @transform_0(%arg0: i32) -> (i32, i32) {
    %c0_i32 = arith.constant 0 : i32
    %c0_i32_0 = arith.constant 0 : i32
    return %arg0, %c0_i32 : i32, i32
  }
  func.func @transform_1(%arg0: i32) -> (i32, i32) {
    %c0_i32 = arith.constant 0 : i32
    %c0_i32_0 = arith.constant 0 : i32
    %c0_i32_1 = arith.constant 0 : i32
    return %c0_i32, %c0_i32_0 : i32, i32
  }
  func.func @transform_2(%arg0: i32) -> (i32, i32) {
    %c0_i32 = arith.constant 0 : i32
    %c0_i32_0 = arith.constant 0 : i32
    %c0_i32_1 = arith.constant 0 : i32
    return %c0_i32, %c0_i32_0 : i32, i32
  }
  func.func @transform_3(%arg0: i32) -> (i32, i32) {
    %c0_i32 = arith.constant 0 : i32
    %c0_i32_0 = arith.constant 0 : i32
    %c0_i32_1 = arith.constant 0 : i32
    return %c0_i32, %c0_i32_0 : i32, i32
  }
  func.func @transform_4(%arg0: i32) -> (i32, i32) {
    %c0_i32 = arith.constant 0 : i32
    %c0_i32_0 = arith.constant 0 : i32
    %c0_i32_1 = arith.constant 0 : i32
    return %c0_i32, %c0_i32_0 : i32, i32
  }
  func.func @transform_5(%arg0: i32) -> (i32, i32) {
    %c0_i32 = arith.constant 0 : i32
    %c0_i32_0 = arith.constant 0 : i32
    %c0_i32_1 = arith.constant 0 : i32
    return %c0_i32, %c0_i32_0 : i32, i32
  }
  func.func @transform_6(%arg0: i32) -> (i32, i32) {
    %c0_i32 = arith.constant 0 : i32
    %c0_i32_0 = arith.constant 0 : i32
    %c0_i32_1 = arith.constant 0 : i32
    return %c0_i32, %c0_i32_0 : i32, i32
  }
  func.func @transform_7(%arg0: i32) -> (i32, i32) {
    %c0_i32 = arith.constant 0 : i32
    %c0_i32_0 = arith.constant 0 : i32
    return %arg0, %c0_i32 : i32, i32
  }
}

</mosaic_0001>

<bundles_post_ra>
// kernel: processer_forward.1
= control target key start
LH: loop header
LB: loop body
LE: loop exit
PB: predicated region body
PF: predicated region fallthrough
CT: control target
= control target key end

     0   :  { %s1361_s24 = smov 0   ;;  %s1530_s0 = inlined_call_operand.vmem [shape: f32[256,32], index: 0, kind: input, shape index: {}]   ;;  %s1531_s1 = inlined_call_operand.vmem [shape: f32[32,32], index: 1, kind: input, shape index: {}]   ;;  %s1532_s2 = inlined_call_operand.vmem [shape: f32[1,32], index: 2, kind: input, shape index: {}]   ;;  %s1533_s3 = inlined_call_operand.vmem [shape: f32[32,32], index: 3, kind: input, shape index: {}]   ;;  %s1534_s4 = inlined_call_operand.vmem [shape: f32[1,32], index: 4, kind: input, shape index: {}]   ;;  %s1535_s5 = inlined_call_operand.vmem [shape: f32[32,32], index: 5, kind: input, shape index: {}]   ;;  %s1536_s6 = inlined_call_operand.vmem [shape: f32[1,32], index: 6, kind: input, shape index: {}]   ;;  %s1537_s7 = inlined_call_operand.vmem [shape: f32[256,32], index: 7, kind: output, shape index: {}]  }
   0x1 LB: > { %s1015_s25 = sadd.s32 4294967295, %s1319_s24   ;;  %p1019_p0 = scmp.ge.s32.totalorder %s1319_s24, 1  ;;  %s1319_s24 = sphi %s1361_s24, %s17_s24  }
   0x2   : > { %p238_p1 = scmp.lt.s32.totalorder %s1319_s24, 3 }
   0x4   : > { %p239_p2 = pnand %p1019_p0, %p238_p1 }
   0x5   : > { %s1020_s30 = sshll.u32 (!%p239_p2), %s1015_s25, 4 }
   0x6   : > { %242 = sbr.rel (%p239_p2) target bundleno = 670 (0x29e), region = 48  ;;  %p271_p3 = scmp.lt.s32.totalorder (!%p239_p2), %s1020_s30, 31 }
   0xb   : > { %v301_v0 = vld [vmem:[%s1531_s1 + $0x18] sm:$0xff]  ;;  %v300_v1 = vld [vmem:[%s1531_s1 + $0x10] sm:$0xff]  ;;  %v299_v2 = vld [vmem:[%s1531_s1 + $0x8] sm:$0xff]  ;;  %s1539_s30 = smov (!%p271_p3, %s1020_s30), 31  ;;  %vm309_vm0 = vcmask 261120  }
   0xc   : > { %1137 = vmatprep.subr.mxu0 %v301_v0  ;;  %1233 = vmatprep.subr.mxu1 %v301_v0  ;;  %v298_v3 = vld [vmem:[%s1531_s1] sm:$0xff]  ;;  %s1021_s12 = sshll.u32 %s1539_s30, 3  ;;  %v522_v20 = vld [vmem:[%s1533_s3 + $0x18] sm:$0xff]  ;;  %v521_v21 = vld [vmem:[%s1533_s3 + $0x10] sm:$0xff] }
   0xd   : > { %1138 = vmatpush3.msra.mxu0 %v301_v0  ;;  %1237 = vmatpush3.msra.mxu1 %v301_v0  ;;  %s1389_s15 = scalar_lea.vmem %s1530_s0, %s1021_s12  ;;  %v520_v22 = vld [vmem:[%s1533_s3 + $0x8] sm:$0xff]  ;;  %v519_v23 = vld [vmem:[%s1533_s3] sm:$0xff]  ;;  %s1493_s20 = scalar_lea.vmem %s1537_s7, %s1021_s12 }
   0xe   : > { %1139 = vmatprep.subr.mxu0 %v300_v1  ;;  %1234 = vmatprep.subr.mxu1 %v300_v1  ;;  %v282_v4 = vld [vmem:[%s1389_s15] sm:$0xff]  ;;  %v283_v5 = vld [vmem:[%s1389_s15 + $0x8] sm:$0xff]  ;;  %v284_v6 = vld [vmem:[%s1389_s15 + $0x10] sm:$0xff] }
   0xf   : > { %1140 = vmatpush3.msra.mxu0 %v300_v1  ;;  %1238 = vmatpush3.msra.mxu1 %v300_v1  ;;  %v290_v7 = vld [vmem:[%s1389_s15 + $0x40] sm:$0xff]  ;;  %v285_v8 = vld [vmem:[%s1389_s15 + $0x18] sm:$0xff]  ;;  %v291_v9 = vld [vmem:[%s1389_s15 + $0x48] sm:$0xff] }
  0x10   : > { %1141 = vmatprep.subr.mxu0 %v299_v2  ;;  %1235 = vmatprep.subr.mxu1 %v299_v2  ;;  %v292_v10 = vld [vmem:[%s1389_s15 + $0x50] sm:$0xff]  ;;  %v286_v11 = vld [vmem:[%s1389_s15 + $0x20] sm:$0xff]  ;;  %v293_v12 = vld [vmem:[%s1389_s15 + $0x58] sm:$0xff] }
  0x11   : > { %1142 = vmatpush3.msra.mxu0 %v299_v2  ;;  %1239 = vmatpush3.msra.mxu1 %v299_v2  ;;  %v294_v13 = vld [vmem:[%s1389_s15 + $0x60] sm:$0xff]  ;;  %v287_v14 = vld [vmem:[%s1389_s15 + $0x28] sm:$0xff]  ;;  %v288_v15 = vld [vmem:[%s1389_s15 + $0x30] sm:$0xff] }
  0x12   : > { %1143 = vmatprep.subr.mxu0 %v298_v3  ;;  %1236 = vmatprep.subr.mxu1 %v298_v3  ;;  %v295_v16 = vld [vmem:[%s1389_s15 + $0x68] sm:$0xff]  ;;  %v296_v17 = vld [vmem:[%s1389_s15 + $0x70] sm:$0xff]  ;;  %v289_v18 = vld [vmem:[%s1389_s15 + $0x38] sm:$0xff] }
  0x13   : > { %1144 = vmatpush3.msra.mxu0 %v298_v3  ;;  %1145 = vmatprep.mubr.msk.f32.mxu0 %vm309_vm0, %v282_v4  ;;  %v297_v19 = vld [vmem:[%s1389_s15 + $0x78] sm:$0xff]  ;;  %v1024_v24 = vld [vmem:[%s1532_s2] ss:$0 sm:$0xff] }
  0x14   : > { %1146 = vmatmul.mubr.msk.f32.vlgmr.msra.gmra.mxu0 %vm309_vm0, %v283_v5  ;;  %1240 = vmatpush3.msra.mxu1 %v298_v3 }
  0x15   : > { %1148 = vmatprep.mubr.msk.f32.mxu0 %vm309_vm0, %v284_v6  ;;  %1157 = vmatprep.mubr.msk.f32.mxu1 %vm309_vm0, %v290_v7 }
  0x16   : > { %1158 = vmatmul.mubr.msk.f32.vlgmr.msra.gmra.mxu1 %vm309_vm0, %v291_v9  ;;  %1169 = vmatprep.subr.mxu1 %v522_v20  ;;  %v742_v9 = vld [vmem:[%s1535_s5 + $0x18] sm:$0xff] }
  0x17   : > { %1160 = vmatprep.mubr.msk.f32.mxu1 %vm309_vm0, %v292_v10  ;;  %1170 = vmatpush3.msra.mxu1 %v522_v20  ;;  %v741_v10 = vld [vmem:[%s1535_s5 + $0x10] sm:$0xff] }
  0x18   : > { %1149 = vmatmul.mubr.msk.f32.gmra.mxu0 %vm309_vm0, %v285_v8  ;;  %1171 = vmatprep.subr.mxu1 %v521_v21 }
  0x19   : > { %1151 = vmatprep.mubr.msk.f32.mxu0 %vm309_vm0, %v286_v11  ;;  %1172 = vmatpush3.msra.mxu1 %v521_v21  ;;  %v740_v11 = vld [vmem:[%s1535_s5 + $0x8] sm:$0xff] }
  0x1a   : > { %1161 = vmatmul.mubr.msk.f32.gmra.mxu1 %vm309_vm0, %v293_v12  ;;  %1173 = vmatprep.subr.mxu1 %v520_v22  ;;  %v739_v12 = vld [vmem:[%s1535_s5] sm:$0xff] }
  0x1b   : > { %1163 = vmatprep.mubr.msk.f32.mxu1 %vm309_vm0, %v294_v13  ;;  %1174 = vmatpush3.msra.mxu1 %v520_v22  ;;  %v1041_v13 = vld [vmem:[%s1534_s4] ss:$0 sm:$0xff] }
  0x1c   : > { %1152 = vmatmul.mubr.msk.f32.gmra.mxu0 %vm309_vm0, %v287_v14  ;;  %1175 = vmatprep.subr.mxu1 %v519_v23 }
  0x1d   : > { %1154 = vmatprep.mubr.msk.f32.mxu0 %vm309_vm0, %v288_v15  ;;  %1176 = vmatpush3.msra.mxu1 %v519_v23 }
  0x1e   : > { %1164 = vmatmul.mubr.msk.f32.gmra.mxu1 %vm309_vm0, %v295_v16  ;;  %1201 = vmatprep.subr.mxu0 %v742_v9 }
  0x1f   : > { %1166 = vmatprep.mubr.msk.f32.mxu1 %vm309_vm0, %v296_v17  ;;  %1202 = vmatpush3.msra.mxu0 %v742_v9 }
  0x20   : > { %1155 = vmatmul.mubr.msk.f32.gmra.mxu0 %vm309_vm0, %v289_v18  ;;  %1203 = vmatprep.subr.mxu0 %v741_v10 }
  0x21   : > { %1204 = vmatpush3.msra.mxu0 %v741_v10 }
  0x22   : > { %1167 = vmatmul.mubr.msk.f32.gmra.mxu1 %vm309_vm0, %v297_v19  ;;  %1205 = vmatprep.subr.mxu0 %v740_v11 }
  0x23   : > { %1206 = vmatpush3.msra.mxu0 %v740_v11 }
  0x24   : > { %1207 = vmatprep.subr.mxu0 %v739_v12 }
  0x25   : > { %1208 = vmatpush3.msra.mxu0 %v739_v12 }
  0xd4   : > { %v1147_v25 = vpop.f32.mrf.mxu0 }
  0xd5   : > { %v430_v26 = vadd.f32 %v1147_v25, %v1024_v24 }
  0xd6   : > { %v424_v27 = vpop.f32.mrf.mxu0  ;;  %v1159_v28 = vpop.f32.mrf.mxu1 }
  0xd7   : > { %v425_v29 = vadd.f32 %v1024_v24, %v424_v27  ;;  %v470_v50 = vadd.f32 %v1159_v28, %v1024_v24 }
  0xd8   : > { %v1150_v30 = vpop.f32.mrf.mxu0  ;;  %v464_v31 = vpop.f32.mrf.mxu1 }
  0xd9   : > { %1249 = vtanh.f32 %v425_v29  ;;  %v440_v32 = vadd.f32 %v1150_v30, %v1024_v24  ;;  %v465_v43 = vadd.f32 %v1024_v24, %v464_v31 }
  0xda   : > { %1251 = vtanh.f32 %v430_v26  ;;  %v434_v33 = vpop.f32.mrf.mxu0  ;;  %v1162_v34 = vpop.f32.mrf.mxu1 }
  0xdb   : > { %v435_v35 = vadd.f32 %v1024_v24, %v434_v33  ;;  %v480_v55 = vadd.f32 %v1162_v34, %v1024_v24 }
  0xdc   : > { %v1153_v36 = vpop.f32.mrf.mxu0  ;;  %v474_v37 = vpop.f32.mrf.mxu1 }
  0xdd   : > { %1253 = vtanh.f32 %v435_v35  ;;  %v450_v38 = vadd.f32 %v1153_v36, %v1024_v24  ;;  %v475_v48 = vadd.f32 %v1024_v24, %v474_v37 }
  0xde   : > { %1255 = vtanh.f32 %v440_v32  ;;  %v444_v39 = vpop.f32.mrf.mxu0  ;;  %v1165_v40 = vpop.f32.mrf.mxu1 }
  0xdf   : > { %v445_v41 = vadd.f32 %v1024_v24, %v444_v39  ;;  %v490_v60 = vadd.f32 %v1165_v40, %v1024_v24 }
  0xe0   : > { %v1156_v42 = vpop.f32.mrf.mxu0  ;;  %v484_v46 = vpop.f32.mrf.mxu1 }
  0xe1   : > { %1257 = vtanh.f32 %v445_v41  ;;  %v460_v44 = vadd.f32 %v1156_v42, %v1024_v24  ;;  %v485_v53 = vadd.f32 %v1024_v24, %v484_v46 }
  0xe2   : > { %1259 = vtanh.f32 %v450_v38  ;;  %v454_v45 = vpop.f32.mrf.mxu0  ;;  %v1168_v51 = vpop.f32.mrf.mxu1 }
  0xe3   : > { %v455_v47 = vadd.f32 %v1024_v24, %v454_v45  ;;  %1261 = vtanh.f32 %v465_v43  ;;  %v500_v0 = vadd.f32 %v1168_v51, %v1024_v24 }
  0xe4   : > { %v494_v56 = vpop.f32.mrf.mxu1 }
  0xe5   : > { %1263 = vtanh.f32 %v455_v47  ;;  %v495_v58 = vadd.f32 %v1024_v24, %v494_v56 }
  0xe6   : > { %v1250_v49 = vpop.eup %1249  ;;  %1265 = vtanh.f32 %v460_v44 }
  0xe7   : > { %v1252_v52 = vpop.eup %1251  ;;  %1177 = vmatprep.mubr.msk.f32.mxu1 %vm309_vm0, %v1250_v49  ;;  %1267 = vtanh.f32 %v475_v48 }
  0xe8   : > { %1178 = vmatmul.mubr.msk.f32.vlgmr.msra.gmra.mxu1 %vm309_vm0, %v1252_v52  ;;  %1269 = vtanh.f32 %v470_v50 }
  0xe9   : > { %1271 = vtanh.f32 %v485_v53 }
  0xea   : > { %v1254_v54 = vpop.eup %1253  ;;  %1273 = vtanh.f32 %v480_v55 }
  0xeb   : > { %v1256_v57 = vpop.eup %1255  ;;  %1180 = vmatprep.mubr.msk.f32.mxu1 %vm309_vm0, %v1254_v54  ;;  %1275 = vtanh.f32 %v495_v58 }
  0xec   : > { %1181 = vmatmul.mubr.msk.f32.gmra.mxu1 %vm309_vm0, %v1256_v57  ;;  %1277 = vtanh.f32 %v490_v60 }
  0xed   : > { %1279 = vtanh.f32 %v500_v0 }
  0xee   : > { %v1258_v59 = vpop.eup %1257 }
  0xef   : > { %v1260_v61 = vpop.eup %1259  ;;  %1183 = vmatprep.mubr.msk.f32.mxu1 %vm309_vm0, %v1258_v59 }
  0xf0   : > { %1184 = vmatmul.mubr.msk.f32.gmra.mxu1 %vm309_vm0, %v1260_v61  ;;  %v1262_v62 = vpop.eup %1261 }
  0xf2   : > { %v1264_v63 = vpop.eup %1263 }
  0xf3   : > { %v1266_v1 = vpop.eup %1265  ;;  %1186 = vmatprep.mubr.msk.f32.mxu1 %vm309_vm0, %v1264_v63 }
  0xf4   : > { %1187 = vmatmul.mubr.msk.f32.gmra.mxu1 %vm309_vm0, %v1266_v1  ;;  %v1268_v2 = vpop.eup %1267 }
  0xf5   : > { %1189 = vmatprep.mubr.msk.f32.mxu1 %vm309_vm0, %v1262_v62  ;;  %v1270_v3 = vpop.eup %1269  ;;  %v1058_v62 = vld [vmem:[%s1536_s6] ss:$0 sm:$0xff] }
  0xf6   : > { %v1272_v4 = vpop.eup %1271 }
  0xf7   : > { %v1274_v5 = vpop.eup %1273 }
  0xf8   : > { %1190 = vmatmul.mubr.msk.f32.gmra.mxu1 %vm309_vm0, %v1270_v3  ;;  %v1276_v6 = vpop.eup %1275 }
  0xf9   : > { %1192 = vmatprep.mubr.msk.f32.mxu1 %vm309_vm0, %v1268_v2  ;;  %v1278_v7 = vpop.eup %1277 }
  0xfa   : > { %v1280_v8 = vpop.eup %1279 }
  0xfc   : > { %1193 = vmatmul.mubr.msk.f32.gmra.mxu1 %vm309_vm0, %v1274_v5 }
  0xfd   : > { %1195 = vmatprep.mubr.msk.f32.mxu1 %vm309_vm0, %v1272_v4 }
 0x100   : > { %1196 = vmatmul.mubr.msk.f32.gmra.mxu1 %vm309_vm0, %v1278_v7 }
 0x101   : > { %1198 = vmatprep.mubr.msk.f32.mxu1 %vm309_vm0, %v1276_v6 }
 0x104   : > { %1199 = vmatmul.mubr.msk.f32.gmra.mxu1 %vm309_vm0, %v1280_v8 }
 0x1a8   : > { %v1179_v14 = vpop.f32.mrf.mxu1 }
 0x1a9   : > { %v650_v15 = vadd.f32 %v1179_v14, %v1041_v13 }
 0x1aa   : > { %v644_v16 = vpop.f32.mrf.mxu1 }
 0x1ab   : > { %v645_v17 = vadd.f32 %v1041_v13, %v644_v16 }
 0x1ac   : > { %v1182_v18 = vpop.f32.mrf.mxu1 }
 0x1ad   : > { %1281 = vtanh.f32 %v645_v17  ;;  %v660_v19 = vadd.f32 %v1182_v18, %v1041_v13 }
 0x1ae   : > { %1283 = vtanh.f32 %v650_v15  ;;  %v654_v20 = vpop.f32.mrf.mxu1 }
 0x1af   : > { %v655_v21 = vadd.f32 %v1041_v13, %v654_v20 }
 0x1b0   : > { %v1185_v22 = vpop.f32.mrf.mxu1 }
 0x1b1   : > { %1285 = vtanh.f32 %v655_v21  ;;  %v670_v23 = vadd.f32 %v1185_v22, %v1041_v13 }
 0x1b2   : > { %1287 = vtanh.f32 %v660_v19  ;;  %v664_v24 = vpop.f32.mrf.mxu1 }
 0x1b3   : > { %v665_v25 = vadd.f32 %v1041_v13, %v664_v24 }
 0x1b4   : > { %v1188_v26 = vpop.f32.mrf.mxu1 }
 0x1b5   : > { %1289 = vtanh.f32 %v665_v25  ;;  %v680_v27 = vadd.f32 %v1188_v26, %v1041_v13 }
 0x1b6   : > { %1291 = vtanh.f32 %v670_v23  ;;  %v674_v28 = vpop.f32.mrf.mxu1 }
 0x1b7   : > { %v675_v29 = vadd.f32 %v1041_v13, %v674_v28 }
 0x1b8   : > { %v1191_v30 = vpop.f32.mrf.mxu1 }
 0x1b9   : > { %1293 = vtanh.f32 %v675_v29  ;;  %v690_v32 = vadd.f32 %v1191_v30, %v1041_v13 }
 0x1ba   : > { %v1282_v31 = vpop.eup %1281  ;;  %1295 = vtanh.f32 %v680_v27  ;;  %v684_v33 = vpop.f32.mrf.mxu1 }
 0x1bb   : > { %v1284_v34 = vpop.eup %1283  ;;  %v685_v35 = vadd.f32 %v1041_v13, %v684_v33  ;;  %1209 = vmatprep.mubr.msk.f32.mxu0 %vm309_vm0, %v1282_v31 }
 0x1bc   : > { %v1194_v36 = vpop.f32.mrf.mxu1  ;;  %1210 = vmatmul.mubr.msk.f32.vlgmr.msra.gmra.mxu0 %vm309_vm0, %v1284_v34 }
 0x1bd   : > { %1297 = vtanh.f32 %v685_v35  ;;  %v700_v38 = vadd.f32 %v1194_v36, %v1041_v13 }
 0x1be   : > { %v1286_v37 = vpop.eup %1285  ;;  %1299 = vtanh.f32 %v690_v32  ;;  %v694_v39 = vpop.f32.mrf.mxu1 }
 0x1bf   : > { %v1288_v40 = vpop.eup %1287  ;;  %v695_v41 = vadd.f32 %v1041_v13, %v694_v39  ;;  %1212 = vmatprep.mubr.msk.f32.mxu0 %vm309_vm0, %v1286_v37 }
 0x1c0   : > { %v1197_v42 = vpop.f32.mrf.mxu1  ;;  %1213 = vmatmul.mubr.msk.f32.gmra.mxu0 %vm309_vm0, %v1288_v40 }
 0x1c1   : > { %1301 = vtanh.f32 %v695_v41  ;;  %v710_v44 = vadd.f32 %v1197_v42, %v1041_v13 }
 0x1c2   : > { %v1290_v43 = vpop.eup %1289  ;;  %1303 = vtanh.f32 %v700_v38  ;;  %v704_v45 = vpop.f32.mrf.mxu1 }
 0x1c3   : > { %v1292_v46 = vpop.eup %1291  ;;  %v705_v47 = vadd.f32 %v1041_v13, %v704_v45  ;;  %1215 = vmatprep.mubr.msk.f32.mxu0 %vm309_vm0, %v1290_v43 }
 0x1c4   : > { %v1200_v48 = vpop.f32.mrf.mxu1  ;;  %1216 = vmatmul.mubr.msk.f32.gmra.mxu0 %vm309_vm0, %v1292_v46 }
 0x1c5   : > { %1305 = vtanh.f32 %v705_v47  ;;  %v720_v50 = vadd.f32 %v1200_v48, %v1041_v13 }
 0x1c6   : > { %v1294_v49 = vpop.eup %1293  ;;  %1307 = vtanh.f32 %v710_v44  ;;  %v714_v51 = vpop.f32.mrf.mxu1 }
 0x1c7   : > { %v1296_v52 = vpop.eup %1295  ;;  %v715_v53 = vadd.f32 %v1041_v13, %v714_v51  ;;  %1218 = vmatprep.mubr.msk.f32.mxu0 %vm309_vm0, %v1294_v49 }
 0x1c8   : > { %1219 = vmatmul.mubr.msk.f32.gmra.mxu0 %vm309_vm0, %v1296_v52 }
 0x1c9   : > { %1309 = vtanh.f32 %v715_v53 }
 0x1ca   : > { %v1298_v54 = vpop.eup %1297  ;;  %1311 = vtanh.f32 %v720_v50 }
 0x1cb   : > { %v1300_v55 = vpop.eup %1299  ;;  %1221 = vmatprep.mubr.msk.f32.mxu0 %vm309_vm0, %v1298_v54 }
 0x1cc   : > { %1222 = vmatmul.mubr.msk.f32.gmra.mxu0 %vm309_vm0, %v1300_v55 }
 0x1ce   : > { %v1302_v56 = vpop.eup %1301 }
 0x1cf   : > { %v1304_v57 = vpop.eup %1303  ;;  %1224 = vmatprep.mubr.msk.f32.mxu0 %vm309_vm0, %v1302_v56 }
 0x1d0   : > { %1225 = vmatmul.mubr.msk.f32.gmra.mxu0 %vm309_vm0, %v1304_v57 }
 0x1d2   : > { %v1306_v58 = vpop.eup %1305 }
 0x1d3   : > { %v1308_v59 = vpop.eup %1307  ;;  %1227 = vmatprep.mubr.msk.f32.mxu0 %vm309_vm0, %v1306_v58 }
 0x1d4   : > { %1228 = vmatmul.mubr.msk.f32.gmra.mxu0 %vm309_vm0, %v1308_v59 }
 0x1d6   : > { %v1310_v60 = vpop.eup %1309 }
 0x1d7   : > { %v1312_v61 = vpop.eup %1311  ;;  %1230 = vmatprep.mubr.msk.f32.mxu0 %vm309_vm0, %v1310_v60 }
 0x1d8   : > { %1231 = vmatmul.mubr.msk.f32.gmra.mxu0 %vm309_vm0, %v1312_v61 }
 0x27c   : > { %v1211_v63 = vpop.f32.mrf.mxu0 }
 0x27d   : > { %v870_v0 = vadd.f32 %v1211_v63, %v1058_v62 }
 0x27e   : > { %v864_v1 = vpop.f32.mrf.mxu0 }
 0x27f   : > { %944 = vst.msk [vmem:[%s1493_s20 + $0x8] sm:$0xff] %vm309_vm0, %v870_v0  ;;  %v865_v2 = vadd.f32 %v1058_v62, %v864_v1 }
 0x280   : > { %v1214_v3 = vpop.f32.mrf.mxu0 }
 0x281   : > { %943 = vst.msk [vmem:[%s1493_s20] sm:$0xff] %vm309_vm0, %v865_v2  ;;  %v880_v4 = vadd.f32 %v1214_v3, %v1058_v62 }
 0x282   : > { %v874_v5 = vpop.f32.mrf.mxu0 }
 0x283   : > { %946 = vst.msk [vmem:[%s1493_s20 + $0x18] sm:$0xff] %vm309_vm0, %v880_v4  ;;  %v875_v6 = vadd.f32 %v1058_v62, %v874_v5 }
 0x284   : > { %v1217_v7 = vpop.f32.mrf.mxu0 }
 0x285   : > { %945 = vst.msk [vmem:[%s1493_s20 + $0x10] sm:$0xff] %vm309_vm0, %v875_v6  ;;  %v890_v8 = vadd.f32 %v1217_v7, %v1058_v62 }
 0x286   : > { %v884_v9 = vpop.f32.mrf.mxu0 }
 0x287   : > { %948 = vst.msk [vmem:[%s1493_s20 + $0x28] sm:$0xff] %vm309_vm0, %v890_v8  ;;  %v885_v10 = vadd.f32 %v1058_v62, %v884_v9 }
 0x288   : > { %v1220_v11 = vpop.f32.mrf.mxu0 }
 0x289   : > { %947 = vst.msk [vmem:[%s1493_s20 + $0x20] sm:$0xff] %vm309_vm0, %v885_v10  ;;  %v900_v12 = vadd.f32 %v1220_v11, %v1058_v62 }
 0x28a   : > { %v894_v13 = vpop.f32.mrf.mxu0 }
 0x28b   : > { %950 = vst.msk [vmem:[%s1493_s20 + $0x38] sm:$0xff] %vm309_vm0, %v900_v12  ;;  %v895_v14 = vadd.f32 %v1058_v62, %v894_v13 }
 0x28c   : > { %v1223_v15 = vpop.f32.mrf.mxu0 }
 0x28d   : > { %949 = vst.msk [vmem:[%s1493_s20 + $0x30] sm:$0xff] %vm309_vm0, %v895_v14  ;;  %v910_v16 = vadd.f32 %v1223_v15, %v1058_v62 }
 0x28e   : > { %v904_v17 = vpop.f32.mrf.mxu0 }
 0x28f   : > { %952 = vst.msk [vmem:[%s1493_s20 + $0x48] sm:$0xff] %vm309_vm0, %v910_v16  ;;  %v905_v18 = vadd.f32 %v1058_v62, %v904_v17 }
 0x290   : > { %v1226_v19 = vpop.f32.mrf.mxu0 }
 0x291   : > { %951 = vst.msk [vmem:[%s1493_s20 + $0x40] sm:$0xff] %vm309_vm0, %v905_v18  ;;  %v920_v20 = vadd.f32 %v1226_v19, %v1058_v62 }
 0x292   : > { %v914_v21 = vpop.f32.mrf.mxu0 }
 0x293   : > { %954 = vst.msk [vmem:[%s1493_s20 + $0x58] sm:$0xff] %vm309_vm0, %v920_v20  ;;  %v915_v22 = vadd.f32 %v1058_v62, %v914_v21 }
 0x294   : > { %v1229_v23 = vpop.f32.mrf.mxu0 }
 0x295   : > { %953 = vst.msk [vmem:[%s1493_s20 + $0x50] sm:$0xff] %vm309_vm0, %v915_v22  ;;  %v930_v24 = vadd.f32 %v1229_v23, %v1058_v62 }
 0x296   : > { %v924_v25 = vpop.f32.mrf.mxu0 }
 0x297   : > { %956 = vst.msk [vmem:[%s1493_s20 + $0x68] sm:$0xff] %vm309_vm0, %v930_v24  ;;  %v925_v26 = vadd.f32 %v1058_v62, %v924_v25 }
 0x298   : > { %v1232_v27 = vpop.f32.mrf.mxu0 }
 0x299   : > { %955 = vst.msk [vmem:[%s1493_s20 + $0x60] sm:$0xff] %vm309_vm0, %v925_v26  ;;  %v940_v28 = vadd.f32 %v1232_v27, %v1058_v62 }
 0x29a   : > { %v934_v29 = vpop.f32.mrf.mxu0 }
 0x29b   : > { %958 = vst.msk [vmem:[%s1493_s20 + $0x78] sm:$0xff] %vm309_vm0, %v940_v28  ;;  %v935_v30 = vadd.f32 %v1058_v62, %v934_v29 }
 0x29d   : > { %957 = vst.msk [vmem:[%s1493_s20 + $0x70] sm:$0xff] %vm309_vm0, %v935_v30 }
 0x29e PF: > { %s17_s24 = sadd.s32 1, %s1319_s24  }
 0x29f   : > { %p14_p4 = scmp.ge.s32.totalorder %s17_s24, 4  }
 0x2a1   :  { %16 = sbr.rel (!%p14_p4) target bundleno = 1 (0x1), region = 78 }

</bundles_post_ra>
